<compile_context>
chip_gen: v5e
topology: v5e:2x2
jax: 0.10.0
libtpu: 0.0.40
codegen_flags: <defaults>
</compile_context>

<pallas_src>
import functools

import jax
import jax.numpy as jnp
from jax.experimental import pallas as pl
from jax.experimental.pallas import tpu as pltpu

_LANES = 128
_PREFERRED_MAX_HW_TILE = 1024           # diminishing roofline returns past ~1k lanes
_VMEM_HEADROOM = 8 * 1024 * 1024        # mosaic internal scratch / misc


def _vmem_capacity_bytes():
    """Generation-aware VMEM capacity (v5e/v6e: 128 MiB, v7x: 64 MiB per core)."""
    try:
        return int(pltpu.get_tpu_info().vmem_capacity_bytes)
    except Exception:
        return 64 * 1024 * 1024          # conservative fallback (v7x per-core)


def _pick_b_tile(batch):
    """Largest divisor of `batch` that is <= 64 and leaves >= 2 batch tiles.

    >= 2 batch tiles keeps the 'parallel' batch axis spanning both v7x
    TensorCores; <= 64 amortizes the per-grid-step overhead and MXU rows in the
    epilogue without bloating the streamed x block.
    """
    if batch <= 1:
        return 1
    best = 1
    for t in range(1, min(64, batch // 2) + 1):
        if batch % t == 0:
            best = t
    return best


def _next_smaller_divisor(batch, t):
    t -= 1
    while t > 1 and batch % t:
        t -= 1
    return max(t, 1)


def classify_block_kernel(x_ref, w1_ref, b1_ref, w2_ref, b2_ref, o_ref,
                          sum_acc, max_acc, *,
                          hw_true, hw_tile, inv_hw, neg_slope, mask_tail,
                          approx_recip):
    hw = pl.program_id(1)
    last = pl.num_programs(1) - 1

    # ---- init running accumulators at the start of each batch tile's reduction
    @pl.when(hw == 0)
    def _init():
        sum_acc[...] = jnp.zeros_like(sum_acc)
        max_acc[...] = jnp.full_like(max_acc, -jnp.inf)

    def _accumulate(masked):
        # One read of the streamed tile; upcast to f32 right after the load so a
        # bf16 input only halves HBM/DMA bytes (all accumulation stays f32).
        x = x_ref[...].astype(jnp.float32)                  # (B_TILE, C, HW_TILE)
        if masked:
            # Final ragged block: lanes past HW are unspecified (out-of-bounds)
            # reads, so mask them for BOTH the sum (0) and the max (-inf).
            lane = jax.lax.broadcasted_iota(jnp.int32, (1, 1, hw_tile), 2)
            valid = (hw * hw_tile + lane) < hw_true
            x_sum = jnp.where(valid, x, 0.0)
            x_max = jnp.where(valid, x, -jnp.inf)
        else:
            x_sum = x
            x_max = x
        sum_acc[...] += jnp.sum(x_sum, axis=-1)                                   # (B_TILE, C)
        max_acc[...] = jnp.maximum(max_acc[...], jnp.max(x_max, axis=-1))         # (B_TILE, C)

    if mask_tail:
        # Masking only on the last hw step; steady-state loop is mask-free.
        @pl.when(hw < last)
        def _steady():
            _accumulate(False)

        @pl.when(hw == last)
        def _tail():
            _accumulate(True)
    else:
        _accumulate(False)

    # ---- epilogue: tiny MLP + softmax once per batch tile
    @pl.when(hw == last)
    def _epilogue():
        feat = sum_acc[...] * inv_hw + max_acc[...]          # avg-pool + max-pool, (B_TILE, C)

        # Dropout is identity in eval mode (droprate=0.0).
        # TODO(synk): train-mode dropout (random masking) not implemented.
        w1 = w1_ref[...]
        h1 = jnp.dot(feat.astype(w1.dtype), w1, preferred_element_type=jnp.float32)
        h1 = h1 + b1_ref[...].astype(jnp.float32)
        h1 = jnp.where(h1 > 0, h1, neg_slope * h1)           # LeakyReLU(0.01)

        w2 = w2_ref[...]
        logits = jnp.dot(h1.astype(w2.dtype), w2, preferred_element_type=jnp.float32)
        logits = logits + b2_ref[...].astype(jnp.float32)

        m = jnp.max(logits, axis=-1, keepdims=True)
        e = jnp.exp(logits - m)
        denom = jnp.sum(e, axis=-1, keepdims=True)
        if approx_recip:
            p = e * pl.reciprocal(denom, approx=True)        # EUP slot, VALU-free
        else:
            p = e / denom
        o_ref[...] = p.astype(o_ref.dtype)


def classify_block(x_nchw, w1, b1, w2, b2, *, negative_slope=0.01,
                   hw_tile=None, x_buffers=None, approx_softmax_recip=True):
    """ClassifyBlock forward.

    x_nchw: (B, C, H, W)  -- any float dtype; streamed through VMEM as-is.
    w1: (C, C), b1: (C,), w2: (K, C), b2: (K,)  -- PyTorch Linear layout, kept
    in their native dtype (bf16 params feed the MXU directly).
    """
    B, C, H, W = x_nchw.shape
    K = w2.shape[0]
    HW = H * W

    x_dtype = x_nchw.dtype
    out_dtype = x_dtype if jnp.issubdtype(x_dtype, jnp.floating) else jnp.float32
    x_item = jnp.dtype(x_dtype).itemsize
    w_item = jnp.dtype(w1.dtype).itemsize
    o_item = jnp.dtype(out_dtype).itemsize

    n_xbuf = 2 if x_buffers is None else max(1, int(x_buffers))

    # ---- generation-aware VMEM budgeting ------------------------------------
    vmem_cap = _vmem_capacity_bytes()
    resident_bytes = w_item * (C * C + C + C * K + K)    # single-buffered weights/biases

    def _stream_budget(bt):
        scratch_bytes = 2 * bt * C * 4                   # f32 sum/max accumulators
        out_bytes = 2 * bt * K * o_item                  # double-buffered output block
        return vmem_cap - _VMEM_HEADROOM - resident_bytes - scratch_bytes - out_bytes

    def _max_lanes(bt):
        return _stream_budget(bt) // (n_xbuf * bt * C * x_item)

    # ---- batch tiling --------------------------------------------------------
    B_TILE = _pick_b_tile(B)
    # Prefer >=512-lane spatial tiles (roofline) over very wide batch tiles...
    while B_TILE > 8 and _max_lanes(B_TILE) < 4 * _LANES:
        B_TILE = _next_smaller_divisor(B, B_TILE)
    # ...and make sure at least a 128-lane tile fits at all.
    while B_TILE > 1 and _max_lanes(B_TILE) < _LANES:
        B_TILE = _next_smaller_divisor(B, B_TILE)
    grid_b = B // B_TILE

    # ---- spatial (lane) tiling -----------------------------------------------
    max_lanes = max(_LANES, _max_lanes(B_TILE))
    if hw_tile is not None:
        HW_TILE = min(int(hw_tile), HW)
        assert HW_TILE == HW or HW_TILE % _LANES == 0, \
            "hw_tile must be a multiple of 128 or cover the full spatial extent"
    elif HW <= min(max_lanes, _PREFERRED_MAX_HW_TILE):
        HW_TILE = HW                                     # full extent: single step, no mask
    else:
        HW_TILE = max(_LANES,
                      min(_PREFERRED_MAX_HW_TILE, (max_lanes // _LANES) * _LANES))
    grid_hw = pl.cdiv(HW, HW_TILE)
    mask_tail = (HW % HW_TILE) != 0                      # ragged tail handled in-kernel (no jnp.pad)

    # ---- plain-JAX glue (no pad, no upcast: stream x in its native dtype) ----
    x4 = x_nchw.reshape(grid_b, B_TILE, C, HW)           # free reshape (splits the leading dim)
    w1_t = jnp.transpose(w1)                             # (C_in, C_out), native dtype
    w2_t = jnp.transpose(w2)                             # (C_in, K)
    b1_2d = b1.reshape(1, C)
    b2_2d = b2.reshape(1, K)

    kernel = functools.partial(
        classify_block_kernel,
        hw_true=HW, hw_tile=HW_TILE, inv_hw=float(1.0 / HW),
        neg_slope=float(negative_slope), mask_tail=mask_tail,
        approx_recip=bool(approx_softmax_recip))

    # Streamed-activation spec; optionally deepen pipelining (e.g. Buffered(3))
    # when HW_TILE ends up <= 256 and DMA issue latency is exposed.
    x_spec_args = ((None, B_TILE, C, HW_TILE), lambda g, h: (g, 0, 0, h))
    if x_buffers is not None:
        try:
            x_spec = pl.BlockSpec(*x_spec_args, pipeline_mode=pl.Buffered(int(x_buffers)))
        except TypeError:                                # older jax without pipeline_mode
            x_spec = pl.BlockSpec(*x_spec_args)
    else:
        x_spec = pl.BlockSpec(*x_spec_args)

    # Constant-index weights/biases: whole-array VMEM residents -> one copy each
    # (no double buffering), fetched once for the whole grid.
    resident = pl.BlockSpec(memory_space=pltpu.MemorySpace.VMEM)

    grid_spec = pltpu.PrefetchScalarGridSpec(
        num_scalar_prefetch=0,
        grid=(grid_b, grid_hw),
        in_specs=[x_spec, resident, resident, resident, resident],
        out_specs=pl.BlockSpec((None, B_TILE, K), lambda g, h: (g, 0, 0)),
        scratch_shapes=[
            pltpu.VMEM((B_TILE, C), jnp.float32),        # running spatial sum
            pltpu.VMEM((B_TILE, C), jnp.float32),        # running spatial max
        ],
    )

    compiler_kwargs = dict(dimension_semantics=("parallel", "arbitrary"))
    need_bytes = (n_xbuf * B_TILE * C * HW_TILE * x_item
                  + resident_bytes
                  + 2 * B_TILE * C * 4
                  + 2 * B_TILE * K * o_item
                  + (4 << 20))
    if need_bytes > 16 * 1024 * 1024:                    # only raise when actually needed
        compiler_kwargs["vmem_limit_bytes"] = int(min(need_bytes, vmem_cap - (2 << 20)))

    cost = pl.CostEstimate(
        flops=int(2 * B * C * HW + 2 * B * C * (C + K)),
        transcendentals=int(B * K),
        bytes_accessed=int(x_item * B * C * HW
                           + w_item * (C * C + C + C * K + K)
                           + o_item * B * K),
    )

    out3 = pl.pallas_call(
        kernel,
        out_shape=jax.ShapeDtypeStruct((grid_b, B_TILE, K), out_dtype),
        grid_spec=grid_spec,
        compiler_params=pltpu.CompilerParams(**compiler_kwargs),
        cost_estimate=cost,
    )(x4, w1_t, b1_2d, w2_t, b2_2d)
    return out3.reshape(B, K)


if __name__ == "__main__":
    # Small deterministic example shapes consistent with the module. W=13 makes
    # HW=208 so a 128-lane tile exercises both the multi-step streaming
    # reduction and the in-kernel ragged-tail masking (no wrapper-side pad).
    B, C, H, W = 2, 8, 16, 13        # num_channels = 8
    K = 8                            # num_classes = 8

    key = jax.random.PRNGKey(0)
    kx, kw1, kb1, kw2, kb2 = jax.random.split(key, 5)

    x = jax.random.normal(kx, (B, C, H, W), dtype=jnp.float32)
    # PyTorch-shaped parameters: Linear weights are (out, in).
    w1 = jax.random.normal(kw1, (C, C), dtype=jnp.float32) * 0.1
    b1 = jax.random.normal(kb1, (C,), dtype=jnp.float32) * 0.1
    w2 = jax.random.normal(kw2, (K, C), dtype=jnp.float32) * 0.1
    b2 = jax.random.normal(kb2, (K,), dtype=jnp.float32) * 0.1

    out = classify_block(x, w1, b1, w2, b2, hw_tile=128)
    out = jax.block_until_ready(out)

    # Pure-JAX reference to validate semantics.
    feat = jnp.mean(x, axis=(2, 3)) + jnp.max(x, axis=(2, 3))
    h = feat @ w1.T + b1
    h = jnp.where(h > 0, h, 0.01 * h)
    ref = jax.nn.softmax(h @ w2.T + b2, axis=-1)
    assert jnp.allclose(out, ref, atol=1e-3, rtol=1e-3), "mismatch vs reference"

    print("KERNEL_OK")
</pallas_src>

<mosaic_0001>
module attributes {stable_mosaic.version = 11 : i64} {
  func.func @classify_block_kernel(%arg0: i32, %arg1: i32, %arg2: memref<1x1x8x128xf32, #tpu.memory_space<vmem>>, %arg3: memref<8x8xf32, #tpu.memory_space<vmem>>, %arg4: memref<1x8xf32, #tpu.memory_space<vmem>>, %arg5: memref<8x8xf32, #tpu.memory_space<vmem>>, %arg6: memref<1x8xf32, #tpu.memory_space<vmem>>, %arg7: memref<1x1x8xf32, #tpu.memory_space<vmem>>, %arg8: memref<1x8xf32, #tpu.memory_space<vmem>>, %arg9: memref<1x8xf32, #tpu.memory_space<vmem>>) attributes {dimension_semantics = [#tpu.dimension_semantics<parallel>, #tpu.dimension_semantics<arbitrary>], iteration_bounds = array<i64: 2, 2>, scalar_prefetch = 0 : i64, scratch_operands = 2 : i64, tpu.core_type = #tpu.core_type<tc>, window_params = [{transform_indices = @transform_0, window_bounds = array<i64: 1, 1, 8, 128>}, {pipeline_mode = #tpu.pipeline_mode<synchronous>, transform_indices = @transform_1, window_bounds = array<i64: 8, 8>}, {pipeline_mode = #tpu.pipeline_mode<synchronous>, transform_indices = @transform_2, window_bounds = array<i64: 1, 8>}, {pipeline_mode = #tpu.pipeline_mode<synchronous>, transform_indices = @transform_3, window_bounds = array<i64: 8, 8>}, {pipeline_mode = #tpu.pipeline_mode<synchronous>, transform_indices = @transform_4, window_bounds = array<i64: 1, 8>}, {transform_indices = @transform_5, window_bounds = array<i64: 1, 1, 8>}]} {
    %c0_i32 = arith.constant 0 : i32
    %0 = arith.cmpi eq, %arg1, %c0_i32 : i32
    %1 = arith.extui %0 : i1 to i32
    %c0_i32_0 = arith.constant 0 : i32
    %2 = arith.cmpi ne, %1, %c0_i32_0 : i32
    scf.if %2 {
      %cst = arith.constant 0.000000e+00 : f32
      %12 = vector.broadcast %cst : f32 to vector<1x8xf32>
      %c0 = arith.constant 0 : index
      %c0_6 = arith.constant 0 : index
      %13 = vector.load %arg8[%c0, %c0_6] : memref<1x8xf32, #tpu.memory_space<vmem>>, vector<1x8xf32>
      tpu.vector_store %arg8[%c0, %c0_6], %12 {strides = array<i32>} : memref<1x8xf32, #tpu.memory_space<vmem>>, vector<1x8xf32>,
      %cst_7 = arith.constant 0xFF800000 : f32
      %14 = vector.broadcast %cst_7 : f32 to vector<1x8xf32>
      %c0_8 = arith.constant 0 : index
      %c0_9 = arith.constant 0 : index
      %15 = vector.load %arg9[%c0_8, %c0_9] : memref<1x8xf32, #tpu.memory_space<vmem>>, vector<1x8xf32>
      tpu.vector_store %arg9[%c0_8, %c0_9], %14 {strides = array<i32>} : memref<1x8xf32, #tpu.memory_space<vmem>>, vector<1x8xf32>,
    } else {
    }
    %c1_i32 = arith.constant 1 : i32
    %3 = arith.cmpi slt, %arg1, %c1_i32 : i32
    %4 = arith.extui %3 : i1 to i32
    %c0_i32_1 = arith.constant 0 : i32
    %5 = arith.cmpi ne, %4, %c0_i32_1 : i32
    scf.if %5 {
      %c0 = arith.constant 0 : index
      %c0_6 = arith.constant 0 : index
      %c0_7 = arith.constant 0 : index
      %c0_8 = arith.constant 0 : index
      %12 = vector.load %arg2[%c0, %c0_6, %c0_7, %c0_8] : memref<1x1x8x128xf32, #tpu.memory_space<vmem>>, vector<1x1x8x128xf32>
      %13 = vector.shape_cast %12 : vector<1x1x8x128xf32> to vector<1x8x128xf32>
      %c0_9 = arith.constant 0 : index
      %c0_10 = arith.constant 0 : index
      %14 = vector.load %arg8[%c0_9, %c0_10] : memref<1x8xf32, #tpu.memory_space<vmem>>, vector<1x8xf32>
      %cst = arith.constant dense<0.000000e+00> : vector<1x8xf32>
      %15 = vector.multi_reduction <add>, %13, %cst [2] : vector<1x8x128xf32> to vector<1x8xf32>
      %16 = arith.addf %14, %15 : vector<1x8xf32>
      %c0_11 = arith.constant 0 : index
      %c0_12 = arith.constant 0 : index
      %17 = vector.load %arg8[%c0_11, %c0_12] : memref<1x8xf32, #tpu.memory_space<vmem>>, vector<1x8xf32>
      tpu.vector_store %arg8[%c0_11, %c0_12], %16 {strides = array<i32>} : memref<1x8xf32, #tpu.memory_space<vmem>>, vector<1x8xf32>,
      %c0_13 = arith.constant 0 : index
      %c0_14 = arith.constant 0 : index
      %18 = vector.load %arg9[%c0_13, %c0_14] : memref<1x8xf32, #tpu.memory_space<vmem>>, vector<1x8xf32>
      %cst_15 = arith.constant dense<0xFF800000> : vector<1x8xf32>
      %19 = vector.multi_reduction <maximumf>, %13, %cst_15 [2] : vector<1x8x128xf32> to vector<1x8xf32>
      %20 = arith.maximumf %18, %19 : vector<1x8xf32>
      %c0_16 = arith.constant 0 : index
      %c0_17 = arith.constant 0 : index
      %21 = vector.load %arg9[%c0_16, %c0_17] : memref<1x8xf32, #tpu.memory_space<vmem>>, vector<1x8xf32>
      tpu.vector_store %arg9[%c0_16, %c0_17], %20 {strides = array<i32>} : memref<1x8xf32, #tpu.memory_space<vmem>>, vector<1x8xf32>,
    } else {
    }
    %c1_i32_2 = arith.constant 1 : i32
    %6 = arith.cmpi eq, %arg1, %c1_i32_2 : i32
    %7 = arith.extui %6 : i1 to i32
    %c0_i32_3 = arith.constant 0 : i32
    %8 = arith.cmpi ne, %7, %c0_i32_3 : i32
    scf.if %8 {
      %c0 = arith.constant 0 : index
      %c0_6 = arith.constant 0 : index
      %c0_7 = arith.constant 0 : index
      %c0_8 = arith.constant 0 : index
      %12 = vector.load %arg2[%c0, %c0_6, %c0_7, %c0_8] : memref<1x1x8x128xf32, #tpu.memory_space<vmem>>, vector<1x1x8x128xf32>
      %13 = vector.shape_cast %12 : vector<1x1x8x128xf32> to vector<1x8x128xf32>
      %14 = tpu.iota {dimensions = array<i32: 2>} : vector<1x1x128xi32>
      %c128_i32 = arith.constant 128 : i32
      %15 = arith.muli %arg1, %c128_i32 : i32
      %16 = vector.broadcast %15 : i32 to vector<1x1x128xi32>
      %17 = arith.addi %16, %14 : vector<1x1x128xi32>
      %c208_i32 = arith.constant 208 : i32
      %18 = vector.broadcast %c208_i32 : i32 to vector<1x1x128xi32>
      %19 = arith.cmpi slt, %17, %18 : vector<1x1x128xi32>
      %cst = arith.constant 0.000000e+00 : f32
      %20 = vector.shape_cast %19 : vector<1x1x128xi1> to vector<1x1x128xi1>
      %21 = vector.broadcast %20 : vector<1x1x128xi1> to vector<1x8x128xi1>
      %22 = vector.broadcast %cst : f32 to vector<1x8x128xf32>
      %23 = arith.select %21, %13, %22 : vector<1x8x128xi1>, vector<1x8x128xf32>
      %cst_9 = arith.constant 0xFF800000 : f32
      %24 = vector.shape_cast %19 : vector<1x1x128xi1> to vector<1x1x128xi1>
      %25 = vector.broadcast %24 : vector<1x1x128xi1> to vector<1x8x128xi1>
      %26 = vector.broadcast %cst_9 : f32 to vector<1x8x128xf32>
      %27 = arith.select %25, %13, %26 : vector<1x8x128xi1>, vector<1x8x128xf32>
      %c0_10 = arith.constant 0 : index
      %c0_11 = arith.constant 0 : index
      %28 = vector.load %arg8[%c0_10, %c0_11] : memref<1x8xf32, #tpu.memory_space<vmem>>, vector<1x8xf32>
      %cst_12 = arith.constant dense<0.000000e+00> : vector<1x8xf32>
      %29 = vector.multi_reduction <add>, %23, %cst_12 [2] : vector<1x8x128xf32> to vector<1x8xf32>
      %30 = arith.addf %28, %29 : vector<1x8xf32>
      %c0_13 = arith.constant 0 : index
      %c0_14 = arith.constant 0 : index
      %31 = vector.load %arg8[%c0_13, %c0_14] : memref<1x8xf32, #tpu.memory_space<vmem>>, vector<1x8xf32>
      tpu.vector_store %arg8[%c0_13, %c0_14], %30 {strides = array<i32>} : memref<1x8xf32, #tpu.memory_space<vmem>>, vector<1x8xf32>,
      %c0_15 = arith.constant 0 : index
      %c0_16 = arith.constant 0 : index
      %32 = vector.load %arg9[%c0_15, %c0_16] : memref<1x8xf32, #tpu.memory_space<vmem>>, vector<1x8xf32>
      %cst_17 = arith.constant dense<0xFF800000> : vector<1x8xf32>
      %33 = vector.multi_reduction <maximumf>, %27, %cst_17 [2] : vector<1x8x128xf32> to vector<1x8xf32>
      %34 = arith.maximumf %32, %33 : vector<1x8xf32>
      %c0_18 = arith.constant 0 : index
      %c0_19 = arith.constant 0 : index
      %35 = vector.load %arg9[%c0_18, %c0_19] : memref<1x8xf32, #tpu.memory_space<vmem>>, vector<1x8xf32>
      tpu.vector_store %arg9[%c0_18, %c0_19], %34 {strides = array<i32>} : memref<1x8xf32, #tpu.memory_space<vmem>>, vector<1x8xf32>,
    } else {
    }
    %c1_i32_4 = arith.constant 1 : i32
    %9 = arith.cmpi eq, %arg1, %c1_i32_4 : i32
    %10 = arith.extui %9 : i1 to i32
    %c0_i32_5 = arith.constant 0 : i32
    %11 = arith.cmpi ne, %10, %c0_i32_5 : i32
    scf.if %11 {
      %c0 = arith.constant 0 : index
      %c0_6 = arith.constant 0 : index
      %12 = vector.load %arg8[%c0, %c0_6] : memref<1x8xf32, #tpu.memory_space<vmem>>, vector<1x8xf32>
      %cst = arith.constant 0.00480769249 : f32
      %13 = vector.broadcast %cst : f32 to vector<1x8xf32>
      %14 = arith.mulf %12, %13 : vector<1x8xf32>
      %c0_7 = arith.constant 0 : index
      %c0_8 = arith.constant 0 : index
      %15 = vector.load %arg9[%c0_7, %c0_8] : memref<1x8xf32, #tpu.memory_space<vmem>>, vector<1x8xf32>
      %16 = arith.addf %14, %15 : vector<1x8xf32>
      %c0_9 = arith.constant 0 : index
      %c0_10 = arith.constant 0 : index
      %17 = vector.load %arg3[%c0_9, %c0_10] : memref<8x8xf32, #tpu.memory_space<vmem>>, vector<8x8xf32>
      %cst_11 = arith.constant dense<0.000000e+00> : vector<1x8xf32>
      %18 = tpu.matmul %16, %17, %cst_11 {dimension_numbers = #tpu.dot_dimension_numbers<[1], [0], [0], [1], [0, 0, 1, 1], [], []>} : vector<1x8xf32>, vector<8x8xf32>, vector<1x8xf32> -> vector<1x8xf32>
      %c0_12 = arith.constant 0 : index
      %c0_13 = arith.constant 0 : index
      %19 = vector.load %arg4[%c0_12, %c0_13] : memref<1x8xf32, #tpu.memory_space<vmem>>, vector<1x8xf32>
      %20 = arith.addf %18, %19 : vector<1x8xf32>
      %cst_14 = arith.constant 0.000000e+00 : f32
      %21 = vector.broadcast %cst_14 : f32 to vector<1x8xf32>
      %22 = arith.cmpf ogt, %20, %21 : vector<1x8xf32>
      %cst_15 = arith.constant 0.00999999977 : f32
      %23 = vector.broadcast %cst_15 : f32 to vector<1x8xf32>
      %24 = arith.mulf %23, %20 : vector<1x8xf32>
      %25 = arith.select %22, %20, %24 : vector<1x8xi1>, vector<1x8xf32>
      %c0_16 = arith.constant 0 : index
      %c0_17 = arith.constant 0 : index
      %26 = vector.load %arg5[%c0_16, %c0_17] : memref<8x8xf32, #tpu.memory_space<vmem>>, vector<8x8xf32>
      %cst_18 = arith.constant dense<0.000000e+00> : vector<1x8xf32>
      %27 = tpu.matmul %25, %26, %cst_18 {dimension_numbers = #tpu.dot_dimension_numbers<[1], [0], [0], [1], [0, 0, 1, 1], [], []>} : vector<1x8xf32>, vector<8x8xf32>, vector<1x8xf32> -> vector<1x8xf32>
      %c0_19 = arith.constant 0 : index
      %c0_20 = arith.constant 0 : index
      %28 = vector.load %arg6[%c0_19, %c0_20] : memref<1x8xf32, #tpu.memory_space<vmem>>, vector<1x8xf32>
      %29 = arith.addf %27, %28 : vector<1x8xf32>
      %cst_21 = arith.constant dense<0xFF800000> : vector<1xf32>
      %30 = vector.multi_reduction <maximumf>, %29, %cst_21 [1] : vector<1x8xf32> to vector<1xf32>
      %31 = vector.shape_cast %30 : vector<1xf32> to vector<1x1xf32>
      %32 = vector.broadcast %31 : vector<1x1xf32> to vector<1x8xf32>
      %33 = arith.subf %29, %32 : vector<1x8xf32>
      %34 = math.exp %33 : vector<1x8xf32>
      %cst_22 = arith.constant dense<0.000000e+00> : vector<1xf32>
      %35 = vector.multi_reduction <add>, %34, %cst_22 [1] : vector<1x8xf32> to vector<1xf32>
      %36 = vector.shape_cast %35 : vector<1xf32> to vector<1x1xf32>
      %37 = tpu.reciprocal %36 {approx = true} : vector<1x1xf32> -> vector<1x1xf32>
      %38 = vector.broadcast %37 : vector<1x1xf32> to vector<1x8xf32>
      %39 = arith.mulf %34, %38 : vector<1x8xf32>
      %c0_23 = arith.constant 0 : index
      %c0_24 = arith.constant 0 : index
      %c0_25 = arith.constant 0 : index
      %40 = vector.load %arg7[%c0_23, %c0_24, %c0_25] : memref<1x1x8xf32, #tpu.memory_space<vmem>>, vector<1x1x8xf32>
      %41 = vector.shape_cast %40 : vector<1x1x8xf32> to vector<1x8xf32>
      %42 = vector.shape_cast %39 : vector<1x8xf32> to vector<1x1x8xf32>
      tpu.vector_store %arg7[%c0_23, %c0_24, %c0_25], %42 {strides = array<i32>} : memref<1x1x8xf32, #tpu.memory_space<vmem>>, vector<1x1x8xf32>,
    } else {
    }
    return
  }
  func.func @transform_0(%arg0: i32, %arg1: i32) -> (i32, i32, i32, i32) {
    %c0_i32 = arith.constant 0 : i32
    %c0_i32_0 = arith.constant 0 : i32
    %c0_i32_1 = arith.constant 0 : i32
    return %arg0, %c0_i32, %c0_i32_0, %arg1 : i32, i32, i32, i32
  }
  func.func @transform_1(%arg0: i32, %arg1: i32) -> (i32, i32) {
    %c0_i32 = arith.constant 0 : i32
    %c0_i32_0 = arith.constant 0 : i32
    %c0_i32_1 = arith.constant 0 : i32
    return %c0_i32, %c0_i32_0 : i32, i32
  }
  func.func @transform_2(%arg0: i32, %arg1: i32) -> (i32, i32) {
    %c0_i32 = arith.constant 0 : i32
    %c0_i32_0 = arith.constant 0 : i32
    %c0_i32_1 = arith.constant 0 : i32
    return %c0_i32, %c0_i32_0 : i32, i32
  }
  func.func @transform_3(%arg0: i32, %arg1: i32) -> (i32, i32) {
    %c0_i32 = arith.constant 0 : i32
    %c0_i32_0 = arith.constant 0 : i32
    %c0_i32_1 = arith.constant 0 : i32
    return %c0_i32, %c0_i32_0 : i32, i32
  }
  func.func @transform_4(%arg0: i32, %arg1: i32) -> (i32, i32) {
    %c0_i32 = arith.constant 0 : i32
    %c0_i32_0 = arith.constant 0 : i32
    %c0_i32_1 = arith.constant 0 : i32
    return %c0_i32, %c0_i32_0 : i32, i32
  }
  func.func @transform_5(%arg0: i32, %arg1: i32) -> (i32, i32, i32) {
    %c0_i32 = arith.constant 0 : i32
    %c0_i32_0 = arith.constant 0 : i32
    %c0_i32_1 = arith.constant 0 : i32
    return %arg0, %c0_i32, %c0_i32_0 : i32, i32, i32
  }
}

</mosaic_0001>

<bundles_post_ra>
// kernel: tpu_custom_call.1
= control target key start
LH: loop header
LB: loop body
LE: loop exit
PB: predicated region body
PF: predicated region fallthrough
CT: control target
= control target key end

     0   :  { %s1272_s0 = inlined_call_operand.hbm [shape: f32[2,1,8,208], index: 0, kind: input, shape index: {}]   ;;  %s1273_s1 = inlined_call_operand.hbm [shape: f32[8,8], index: 1, kind: input, shape index: {}]   ;;  %s1274_s2 = inlined_call_operand.vmem [shape: f32[1,8], index: 2, kind: input, shape index: {}]   ;;  %s1275_s3 = inlined_call_operand.hbm [shape: f32[8,8], index: 3, kind: input, shape index: {}]   ;;  %s1276_s4 = inlined_call_operand.vmem [shape: f32[1,8], index: 4, kind: input, shape index: {}]   ;;  %s1277_s5 = inlined_call_operand.hbm [shape: f32[2,1,8], index: 5, kind: output, shape index: {}]  }
   0x1   :  { %1284 = sst [smem:[#allocation20_spill]] %s1273_s1 }
   0x2   :  { %1285 = sst [smem:[#allocation21_spill]] %s1274_s2 }
   0x3   :  { %1286 = sst [smem:[#allocation22_spill]] %s1275_s3 }
   0x4   :  { %1287 = sst [smem:[#allocation23_spill]] %s1276_s4 }
   0x5   :  { %1288 = sst [smem:[#allocation24_spill]] %s1277_s5 }
   0x6   :  { %10 = vsyncpa [#allocation5], 0 }
   0x7   :  { %12 = vsyncpa [#allocation5 + $0x1], 0 }
   0x8   :  { %13 = vsyncpa [#allocation8], 0 }
   0x9   :  { %14 = vsyncpa [#allocation6], 0 }
   0xa   :  { %16 = vsyncpa [#allocation6 + $0x1], 0  ;;  %s1048_s18 = smov 0   ;;  %s1050_s19 = smov 0  }
   0xb   :  { %s1052_s20 = smov 0   ;;  %s1054_s21 = smov 0  }
   0xc   :  { %s1056_s22 = smov 0   ;;  %s1058_s23 = smov 0  }
   0xd   :  { %s1060_s24 = smov 0   ;;  %s1062_s25 = smov 0  }
   0xe   :  { %s1064_s26 = smov 0   ;;  %s1066_s27 = smov 0  }
   0xf   :  { %s1068_s28 = smov 0  }
  0x10 LB: > { %1289 = sst [smem:[#allocation14_spill]] %s970_s18  ;;  %s638_s29 = sadd.s32 4294967295, %s1010_s28   ;;  %s1010_s28 = sphi %s1068_s28, %s22_s28   ;;  %s1006_s27 = sphi %s1066_s27, %s1324_s27   ;;  %s1002_s26 = sphi %s1064_s26, %s1323_s26   ;;  %s998_s25 = sphi %s1062_s25, %s1322_s25   ;;  %s994_s24 = sphi %s1060_s24, %s1321_s24   ;;  %s990_s23 = sphi %s1058_s23, %s1320_s23   ;;  %s986_s22 = sphi %s1056_s22, %s1319_s22   ;;  %s982_s21 = sphi %s1054_s21, %s1318_s21   ;;  %s978_s20 = sphi %s1052_s20, %s1317_s20   ;;  %s974_s19 = sphi %s1050_s19, %s1316_s19   ;;  %s970_s18 = sphi %s1048_s18, %s1315_s18  }
  0x11   : > { %1290 = sst [smem:[#allocation15_spill]] %s994_s24  ;;  %s639_s30 = sadd.s32 4294967294, %s1010_s28  }
  0x12   : > { %1291 = sst [smem:[#allocation16_spill]] %s998_s25  ;;  %p56_p0 = scmp.ne.s32.totalorder %s986_s22, %s982_s21 }
  0x13   : > { %p1104_p1 = scmp.eq.s32.totalorder %s638_s29, 0  ;;  %p163_p2 = scmp.ne.s32.totalorder %s978_s20, %s974_s19 }
  0x14   : > { %p164_p3 = scmp.eq.s32.totalorder %s638_s29, 3  ;;  %p169_p5 = scmp.ne.s32.totalorder %s974_s19, %s970_s18 }
  0x15   : > { %p1112_p4 = por %p1104_p1, %p56_p0  ;;  %p170_p7 = scmp.eq.s32.totalorder %s639_s30, 3 }
  0x16   : > { %p1118_p6 = por %p164_p3, %p163_p2  ;;  %p640_p8 = scmp.ge.s32.totalorder %s1010_s28, 1 }
  0x17   : > { %p177_p9 = scmp.lt.s32.totalorder %s1010_s28, 5  ;;  %p1124_p10 = por %p170_p7, %p169_p5 }
  0x18   : > { %s1294_s8 = scalar_select %p1118_p6, 1, 0 }
  0x19   : > { %s1296_s9 = scalar_select %p1124_p10, 1, 0 }
  0x1a   : > { %1295 = sst [smem:[#allocation17_spill]] %s1294_s8  ;;  %p1128_p11 = pnand %p640_p8, %p177_p9 }
  0x1b   : > { %1297 = sst [smem:[#allocation18_spill]] %s1296_s9  ;;  %s1012_s14 = smov [#allocation7]  }
  0x1c   : > { %s1299_s1 = sld [smem:[#allocation20_spill]]  ;;  %p671_p12 = pneg %p1128_p11 }
  0x1d   : > { %s191_s15 = sshll.u32 %s1012_s14, 4  ;;  %s1300_s3 = sld [smem:[#allocation22_spill]]  ;;  %s192_s15 = int_to_ptr.vmem [resolvable:$true] %s191_s15 }
  0x1e   : > { %p672_p13 = pnand %p671_p12, %p1104_p1  ;;  %s1013_s29 = smov [#allocation9]  }
  0x1f   : > { %s206_s30 = sshll.u32 %s1013_s29, 4  ;;  %s31_s11 = sadd.s32 1, %s1002_s26  ;;  %s207_s30 = int_to_ptr.vmem [resolvable:$true] %s206_s30 }
  0x20   : > { %p32_p0 = scmp.ge.s32.totalorder %s31_s11, 2  ;;  %s34_s12 = sadd.s32 1, %s1006_s27 }
  0x21   : > { %s43_s14 = sadd.s32 1, %s990_s23  ;;  %p50_p2 = scmp.ne.s32.totalorder %s990_s23, %s986_s22 }
  0x22   : > { %s189_s13 = sshll.u32 %s1299_s1, 4  ;;  %s1326_s11 = smov (%p32_p0, %s31_s11), 0  ;;  %s190_s13 = int_to_ptr.hbm [resolvable:$true] %s189_s13 }
  0x23   : > { %s204_s21 = sshll.u32 %s1300_s3, 4  ;;  %1301 = sst [smem:[#allocation19_spill]] %s1326_s11  ;;  %s205_s21 = int_to_ptr.hbm [resolvable:$true] %s204_s21 }
  0x24   : > { %674 = dma.hbm_to_vmem [thread:$0]  (!%p672_p13), %s190_s13, 128, %s192_s15, [#allocation8]  }
  0x25   : > { %677 = dma.hbm_to_vmem [thread:$0]  (!%p672_p13), %s205_s21, 128, %s207_s30, [#allocation8]  }
  0x26   : > { %s1328_s12 = smov (!%p32_p0, %s34_s12), %s1006_s27  ;;  %s39_s16 = ssub.s32 %s1002_s26, %s1326_s11 }
  0x27   : > { %p51_p3 = scmp.eq.s32.totalorder %s1010_s28, 0  ;;  %p36_p5 = scmp.ge.s32.totalorder %s1328_s12, 2 }
  0x28   : > { %s153_s13 = sadd.s32 1, %s978_s20  ;;  %p688_p8 = scmp.lt.s32.totalorder %s1010_s28, 4 }
  0x29   : > { %p1154_p7 = por %p51_p3, %p50_p2  ;;  %s1330_s12 = smov (%p36_p5, %s1328_s12), 0 }
  0x2a   : > { %s220_s17 = sand.u32 1, %s990_s23   ;;  %s645_s21 = sshll.u32 %s1006_s27, 1 }
  0x2b   : > { %s38_s29 = ssub.s32 %s1006_s27, %s1330_s12  ;;  %s644_s1 = sshll.u32 %s220_s17, 3 }
  0x2c   : > { %s40_s30 = sor.u32 %s39_s16, %s38_s29  ;;  %p151_p9 = scmp.eq.s32.totalorder %s38_s29, 0 }
  0x2d   : > { %p41_p12 = scmp.eq.s32.totalorder %s40_s30, 0  ;;  %s228_s9 = sadd.s32 %s1002_s26, %s645_s21 }
  0x2e   : > { %s1166_s3 = scalar_select %p151_p9, %s978_s20, %s153_s13  }
  0x2f   : > { %s1169_s11 = scalar_select %p41_p12, %s990_s23, %s43_s14  }
  0x30   : > { %s646_s18 = sshll.u32 %s228_s9, 3  ;;  %s224_s8 = scalar_lea.vmem [#allocation4], %s644_s1 }
  0x31   : > { %s234_s5 = sshll.u32 %s224_s8, 4  ;;  %s230_s2 = scalar_lea.hbm %s1272_s0, %s646_s18  ;;  %s235_s5 = int_to_ptr.vmem [resolvable:$true] %s234_s5 }
  0x32   : > { %s232_s24 = sshll.u32 %s230_s2, 4  ;;  %p679_p13 = pnand %p688_p8, %p1154_p7  ;;  %s233_s24 = int_to_ptr.hbm [resolvable:$true] %s232_s24 }
  0x33   : > { %s221_s16 = scalar_lea.sflag [#allocation5], %s220_s17  ;;  %243 = sbr.rel (%p1128_p11) target bundleno = 1190 (0x4a6), region = 40 }
  0x34   : > { %681 = dma.hbm_to_vmem [thread:$0]  (!%p679_p13), %s233_s24, 128, %s235_s5, %s221_s16  }
  0x35   : > { %s245_s9 = sand.u32 (!%p1128_p11), 1, %s986_s22  }
  0x36   : > { %s1182_s1 = sshll.u32 (!%p1128_p11), %s245_s9, 3  ;;  %s246_s8 = scalar_lea.sflag (!%p1128_p11), [#allocation5], %s245_s9 }
  0x37   : > { %s249_s4 = scalar_lea.vmem (!%p1128_p11), [#allocation4], %s1182_s1 }
  0x38   : > { %957 = dma.done.wait (%p1112_p4), %s246_s8, 128  }
  0x39   : > { %959 = vsyncadd (%p1112_p4), %s246_s8, 4294967168 }
  0x3a   : > { %961 = dma.done.wait (%p1104_p1), [#allocation8], 256  }
  0x3b   : > { %963 = vsyncadd (%p1104_p1), [#allocation8], 4294967040  ;;  %s284_s2 = sand.u32 1, %s974_s19   ;;  %s1303_s18 = sld [smem:[#allocation15_spill]] }
  0x3c   : > { %s1196_s5 = scalar_lea.vmem [#allocation10], %s284_s2 }
  0x41   : > { %p651_p11 = scmp.ne.s32.totalorder %s1303_s18, 0 }
  0x43   : > { %289 = sbr.rel (%p651_p11) target bundleno = 75 (0x4b), region = 56 }
  0x48   : > { %vm290_vm0 = vcmask 57344   ;;  %v1014_v0 = vmov 0.0   ;;  %v1015_v1 = vmov -inf  }
  0x49   : > { %291 = vst.msk [vmem:[#allocation2] sm:$0x1] %vm290_vm0, %v1014_v0 }
  0x4a   : > { %292 = vst.msk [vmem:[#allocation3] sm:$0x1] %vm290_vm0, %v1015_v1 }
  0x4b PF: > { %s1304_s24 = sld [smem:[#allocation15_spill]] }
  0x51   : > { %p652_p4 = scmp.ge.s32.totalorder %s1304_s24, 1 }
  0x53   : > { %296 = sbr.rel (%p652_p4) target bundleno = 357 (0x165), region = 60 }
  0x58   : > { %v297_v2 = vld [vmem:[%s249_s4] sm:$0xff]  ;;  %v1016_v3 = vmov 0   ;;  %v329_v24 = vlaneseq  ;;  %v298_v26 = vld [vmem:[#allocation2] sm:$0x1]  ;;  %vm334_vm1 = vcmask 57344  }
  0x59   : > { %299 = vadd.xlane.f32.xlu0 %v297_v2  ;;  %786 = vset.pattern.permute.xlu1 %v1016_v3  ;;  %v336_v30 = vld [vmem:[#allocation3] sm:$0x1] }
  0x5a   : > { %787 = vset.pattern.permute.xlu0 %v1016_v3  ;;  %v330_v25 = vand.u32 127, %v329_v24 }
  0x61   : > { %337 = vmax.xlane.f32.xlu0 %v297_v2 }
  0xcc   : > { %v300_v4 = vpop.xlane.xlu0 %299 }
  0xcd   : > { %v302_v5 = vperm.slane %v300_v4, 0  ;;  %v303_v6 = vperm.slane %v300_v4, 1  ;;  %v304_v7 = vperm.slane %v300_v4, 2  ;;  %v305_v8 = vperm.slane %v300_v4, 3 }
  0xce   : > { %v306_v9 = vperm.slane %v300_v4, 4  ;;  %v307_v10 = vperm.slane %v300_v4, 5  ;;  %v308_v11 = vperm.slane %v300_v4, 6  ;;  %v309_v12 = vperm.slane %v300_v4, 7 }
  0xcf   : > { %310 = vst [vmem:[#allocation1] ss:$9 sm:$0xff] %v302_v5 }
  0xd0   : > { %312 = vst [vmem:[#allocation1 + $0x1] ss:$9 sm:$0xff] %v303_v6 }
  0xd1   : > { %314 = vst [vmem:[#allocation1 + $0x2] ss:$9 sm:$0xff] %v304_v7 }
  0xd2   : > { %316 = vst [vmem:[#allocation1 + $0x3] ss:$9 sm:$0xff] %v305_v8 }
  0xd3   : > { %318 = vst [vmem:[#allocation1 + $0x4] ss:$9 sm:$0xff] %v306_v9 }
  0xd4   : > { %320 = vst [vmem:[#allocation1 + $0x5] ss:$9 sm:$0xff] %v307_v10  ;;  %v338_v13 = vpop.xlane.xlu0 %337 }
  0xd5   : > { %322 = vst [vmem:[#allocation1 + $0x6] ss:$9 sm:$0xff] %v308_v11  ;;  %v340_v14 = vperm.slane %v338_v13, 0  ;;  %v341_v15 = vperm.slane %v338_v13, 1  ;;  %v342_v16 = vperm.slane %v338_v13, 2  ;;  %v343_v17 = vperm.slane %v338_v13, 3 }
  0xd6   : > { %324 = vst [vmem:[#allocation1 + $0x7] ss:$9 sm:$0xff] %v309_v12  ;;  %v344_v19 = vperm.slane %v338_v13, 4  ;;  %v345_v20 = vperm.slane %v338_v13, 5  ;;  %v346_v21 = vperm.slane %v338_v13, 6  ;;  %v347_v22 = vperm.slane %v338_v13, 7 }
  0xdd   : > { %v325_v18 = vld [vmem:[#allocation1] sm:$0xff] }
  0xde   : > { %327 = vperm.xlu1 %786, %v325_v18   ;;  %348 = vst [vmem:[#allocation1] ss:$9 sm:$0xff] %v340_v14 }
  0xdf   : > { %350 = vst [vmem:[#allocation1 + $0x1] ss:$9 sm:$0xff] %v341_v15 }
  0xe0   : > { %352 = vst [vmem:[#allocation1 + $0x2] ss:$9 sm:$0xff] %v342_v16 }
  0xe1   : > { %354 = vst [vmem:[#allocation1 + $0x3] ss:$9 sm:$0xff] %v343_v17 }
  0xe2   : > { %356 = vst [vmem:[#allocation1 + $0x4] ss:$9 sm:$0xff] %v344_v19 }
  0xe3   : > { %358 = vst [vmem:[#allocation1 + $0x5] ss:$9 sm:$0xff] %v345_v20 }
  0xe4   : > { %360 = vst [vmem:[#allocation1 + $0x6] ss:$9 sm:$0xff] %v346_v21 }
  0xe5   : > { %362 = vst [vmem:[#allocation1 + $0x7] ss:$9 sm:$0xff] %v347_v22 }
  0xec   : > { %v363_v23 = vld [vmem:[#allocation1] sm:$0xff] }
  0xed   : > { %365 = vperm.xlu1 %786, %v363_v23  }
 0x150   : > { %v328_v27 = vpop.permute.xlu1 %327 }
 0x151   : > { %v331_v28 = vperm.slane %v328_v27, %v330_v25 }
 0x153   : > { %v333_v29 = vadd.f32 %v331_v28, %v298_v26 }
 0x155   : > { %335 = vst.msk [vmem:[#allocation2] sm:$0x1] %vm334_vm1, %v333_v29 }
 0x15f   : > { %v366_v31 = vpop.permute.xlu1 %365 }
 0x160   : > { %v367_v32 = vperm.slane %v366_v31, %v330_v25 }
 0x162   : > { %v369_v33 = vmax.f32 %v336_v30, %v367_v32 }
 0x164   : > { %370 = vst.msk [vmem:[#allocation3] sm:$0x1] %vm334_vm1, %v369_v33 }
 0x165 PF: > { %s1305_s25 = sld [smem:[#allocation15_spill]] }
 0x16b   : > { %p653_p1 = scmp.ne.s32.totalorder %s1305_s25, 1 }
 0x16c   : > { %s1306_s6 = sld [smem:[#allocation15_spill]] (!%p653_p1) }
 0x16d   : > { %374 = sbr.rel (%p653_p1) target bundleno = 1169 (0x491), region = 64  ;;  %s1307_s13 = sld [smem:[#allocation21_spill]] (!%p653_p1) }
 0x16e   : > { %s1308_s21 = sld [smem:[#allocation23_spill]] (!%p653_p1) }
 0x172   : > { %v376_v34 = vlaneseq  ;;  %s654_s7 = sshll.u32 %s1306_s6, 7  ;;  %v375_v37 = vld [vmem:[%s249_s4] sm:$0xff]  ;;  %v1017_v41 = vmov 0   ;;  %v461_v62 = vld [vmem:[#allocation7] sm:$0xff]  ;;  %v386_v63 = vld [vmem:[#allocation2] sm:$0x1] }
 0x173   : > { %v379_v35 = vstv %s654_s7  ;;  %788 = vset.pattern.permute.xlu1 %v1017_v41  ;;  %789 = vset.pattern.permute.xlu0 %v1017_v41  ;;  %vm420_vm3 = vcmask 57344   ;;  %v422_v3 = vld [vmem:[#allocation3] sm:$0x1]  ;;  %vm463_vm4 = vcmask 64512   ;;  %v462_v12 = vld [vmem:[%s1307_s13] sm:$0x1] }
 0x174   : > { %v377_v36 = vand.u32 127, %v376_v34  ;;  %482 = vmatpush.msra.mxu0 %v461_v62  ;;  %v490_v11 = vld [vmem:[#allocation9] sm:$0xff]  ;;  %v491_v17 = vld [vmem:[%s1308_s21] sm:$0x1] }
 0x175   : > { %510 = vmatpush.msra.mxu1 %v490_v11 }
 0x176   : > { %v380_v38 = vadd.s32 %v379_v35, %v377_v36 }
 0x178   : > { %vm381_vm2 = vcmp.lt.s32.totalorder %v380_v38, 208 }
 0x179   : > { %v384_v39 = vsel %vm381_vm2, %v375_v37, 0.0  ;;  %v385_v40 = vsel %vm381_vm2, %v375_v37, -inf }
 0x17a   : > { %387 = vadd.xlane.f32.xlu0 %v384_v39 }
 0x182   : > { %423 = vmax.xlane.f32.xlu0 %v385_v40 }
 0x1ed   : > { %v388_v42 = vpop.xlane.xlu0 %387 }
 0x1ee   : > { %v390_v43 = vperm.slane %v388_v42, 0  ;;  %v391_v44 = vperm.slane %v388_v42, 1  ;;  %v392_v45 = vperm.slane %v388_v42, 2  ;;  %v393_v46 = vperm.slane %v388_v42, 3 }
 0x1ef   : > { %v394_v47 = vperm.slane %v388_v42, 4  ;;  %v395_v48 = vperm.slane %v388_v42, 5  ;;  %v396_v49 = vperm.slane %v388_v42, 6  ;;  %v397_v50 = vperm.slane %v388_v42, 7 }
 0x1f0   : > { %398 = vst [vmem:[#allocation1] ss:$9 sm:$0xff] %v390_v43 }
 0x1f1   : > { %400 = vst [vmem:[#allocation1 + $0x1] ss:$9 sm:$0xff] %v391_v44 }
 0x1f2   : > { %402 = vst [vmem:[#allocation1 + $0x2] ss:$9 sm:$0xff] %v392_v45 }
 0x1f3   : > { %404 = vst [vmem:[#allocation1 + $0x3] ss:$9 sm:$0xff] %v393_v46 }
 0x1f4   : > { %406 = vst [vmem:[#allocation1 + $0x4] ss:$9 sm:$0xff] %v394_v47 }
 0x1f5   : > { %408 = vst [vmem:[#allocation1 + $0x5] ss:$9 sm:$0xff] %v395_v48  ;;  %v424_v51 = vpop.xlane.xlu0 %423 }
 0x1f6   : > { %410 = vst [vmem:[#allocation1 + $0x6] ss:$9 sm:$0xff] %v396_v49  ;;  %v426_v52 = vperm.slane %v424_v51, 0  ;;  %v427_v53 = vperm.slane %v424_v51, 1  ;;  %v428_v54 = vperm.slane %v424_v51, 2  ;;  %v429_v55 = vperm.slane %v424_v51, 3 }
 0x1f7   : > { %412 = vst [vmem:[#allocation1 + $0x7] ss:$9 sm:$0xff] %v397_v50  ;;  %v430_v57 = vperm.slane %v424_v51, 4  ;;  %v431_v58 = vperm.slane %v424_v51, 5  ;;  %v432_v59 = vperm.slane %v424_v51, 6  ;;  %v433_v60 = vperm.slane %v424_v51, 7 }
 0x1fe   : > { %v413_v56 = vld [vmem:[#allocation1] sm:$0xff] }
 0x1ff   : > { %415 = vperm.xlu1 %788, %v413_v56   ;;  %434 = vst [vmem:[#allocation1] ss:$9 sm:$0xff] %v426_v52 }
 0x200   : > { %436 = vst [vmem:[#allocation1 + $0x1] ss:$9 sm:$0xff] %v427_v53 }
 0x201   : > { %438 = vst [vmem:[#allocation1 + $0x2] ss:$9 sm:$0xff] %v428_v54 }
 0x202   : > { %440 = vst [vmem:[#allocation1 + $0x3] ss:$9 sm:$0xff] %v429_v55 }
 0x203   : > { %442 = vst [vmem:[#allocation1 + $0x4] ss:$9 sm:$0xff] %v430_v57 }
 0x204   : > { %444 = vst [vmem:[#allocation1 + $0x5] ss:$9 sm:$0xff] %v431_v58 }
 0x205   : > { %446 = vst [vmem:[#allocation1 + $0x6] ss:$9 sm:$0xff] %v432_v59 }
 0x206   : > { %448 = vst [vmem:[#allocation1 + $0x7] ss:$9 sm:$0xff] %v433_v60 }
 0x20d   : > { %v449_v61 = vld [vmem:[#allocation1] sm:$0xff] }
 0x20e   : > { %451 = vperm.xlu1 %788, %v449_v61  }
 0x271   : > { %v416_v0 = vpop.permute.xlu1 %415 }
 0x272   : > { %v417_v1 = vperm.slane %v416_v0, %v377_v36 }
 0x274   : > { %v419_v2 = vadd.f32 %v417_v1, %v386_v63 }
 0x276   : > { %421 = vst.msk [vmem:[#allocation2] sm:$0x1] %vm420_vm3, %v419_v2 }
 0x27d   : > { %v457_v7 = vld [vmem:[#allocation2] sm:$0x1] }
 0x27e   : > { %v458_v8 = vmul.f32 0.0048076925, %v457_v7 }
 0x280   : > { %v452_v4 = vpop.permute.xlu1 %451 }
 0x281   : > { %v453_v5 = vperm.slane %v452_v4, %v377_v36 }
 0x283   : > { %v455_v6 = vmax.f32 %v422_v3, %v453_v5 }
 0x285   : > { %456 = vst.msk [vmem:[#allocation3] sm:$0x1] %vm420_vm3, %v455_v6 }
 0x28c   : > { %v459_v9 = vld [vmem:[#allocation3] sm:$0x1] }
 0x28d   : > { %v460_v10 = vadd.f32 %v459_v9, %v458_v8 }
 0x28f   : > { %655 = vmatmul.msk.f32.vlgmr.msra.gmra.mxu0 %vm463_vm4, %v460_v10 }
 0x30c   : > { %v484_v13 = vpop.f32.mrf.mxu0 }
 0x30d   : > { %v485_v14 = vadd.f32 %v484_v13, %v462_v12 }
 0x30f   : > { %v488_v15 = vmul.f32 0.01, %v485_v14  ;;  %vm487_vm5 = vcmp.gt.f32.partialorder %v485_v14, 0.0 }
 0x311   : > { %v489_v16 = vsel %vm487_vm5, %v485_v14, %v488_v15 }
 0x312   : > { %656 = vmatmul.msk.f32.vlgmr.msra.gmra.mxu1 %vm463_vm4, %v489_v16 }
 0x38f   : > { %v512_v18 = vpop.f32.mrf.mxu1 }
 0x390   : > { %v513_v19 = vadd.f32 %v512_v18, %v491_v17 }
 0x392   : > { %v515_v20 = vsel %vm420_vm3, %v513_v19, -inf }
 0x393   : > { %516 = vmax.xlane.f32.xlu2 %v515_v20 }
 0x406   : > { %v517_v21 = vpop.xlane.xlu2 %516 }
 0x407   : > { %v518_v22 = vsub.f32 %v513_v19, %v517_v21 }
 0x409   : > { %v519_v23 = vmul.f32 1.442695, %v518_v22 }
 0x40b   : > { %790 = vpow2.f32 %v519_v23 }
 0x411   : > { %v791_v24 = vpop.eup %790 }
 0x412   : > { %v521_v25 = vsel %vm420_vm3, %v791_v24, 0.0 }
 0x413   : > { %522 = vadd.xlane.f32.xlu2 %v521_v25 }
 0x486   : > { %v523_v26 = vpop.xlane.xlu2 %522 }
 0x487   : > { %792 = vrcp.f32 %v523_v26 }
 0x48d   : > { %v793_v27 = vpop.eup %792 }
 0x48e   : > { %v525_v28 = vmul.f32 %v793_v27, %v791_v24 }
 0x490   : > { %526 = vst.msk [vmem:[%s1196_s5] sm:$0x1] %vm420_vm3, %v525_v28 }
 0x491 PF: > { %s1309_s29 = sld [smem:[#allocation16_spill]]  ;;  %s538_s4 = sshll.u32 %s1196_s5, 4  ;;  %s539_s4 = int_to_ptr.vmem [resolvable:$true] %s538_s4 }
 0x492   : > { %s1310_s9 = sld [smem:[#allocation24_spill]]  ;;  %s528_s24 = scalar_lea.sflag [#allocation6], %s284_s2 }
 0x498   : > { %s536_s8 = scalar_lea.hbm %s1310_s9, %s1309_s29  ;;  %s904_s14 = scalar_lea.hbm %s1310_s9, 2 }
 0x499   : > { %s540_s18 = sshll.u32 %s536_s8, 4  ;;  %s541_s18 = int_to_ptr.hbm [resolvable:$true] %s540_s18 }
 0x49a   : > { %s898_s25 = sshra.s32 %s541_s18, 4  ;;  %s899_s25 = int_to_ptr.hbm [resolvable:$true] %s898_s25 }
 0x49b   : > { %s900_s6 = scalar_lea.hbm %s899_s25, 1  ;;  %p905_p5 = scmp.lt.s32.totalorder %s899_s25, %s1310_s9 }
 0x49c   : > { %p901_p0 = scmp.ne.s32.totalorder %s899_s25, %s900_s6  ;;  %p906_p7 = scmp.lt.s32.totalorder %s904_s14, %s900_s6 }
 0x49e   : > { %p902_p2 = pnand %p901_p0, %p1118_p6  ;;  %p907_p8 = por %p906_p7, %p905_p5 }
 0x4a0   : > { %p903_p3 = pneg %p902_p2 }
 0x4a2   : > { %p908_p9 = pnand %p907_p8, %p903_p3 }
 0x4a4   : > { %911 = shalt.err (!%p908_p9)
}
 0x4a5   : > { %669 = dma.vmem_to_hbm [thread:$0]  (%p1118_p6), %s539_s4, 16, %s541_s18, %s528_s24  }
 0x4a6 PF: > { %s1312_s2 = sld [smem:[#allocation14_spill]]  ;;  %p691_p12 = scmp.ge.s32.totalorder %s1010_s28, 2 }
 0x4a8   : > { %p683_p13 = pnand %p691_p12, %p1124_p10 }
 0x4aa   : > { %p684_p11 = pneg %p683_p13 }
 0x4ac   : > { %s552_s17 = sand.u32 1, %s1312_s2  }
 0x4ad   : > { %s553_s21 = scalar_lea.sflag [#allocation6], %s552_s17 }
 0x4ae   : > { %965 = dma.done.wait (%p684_p11), %s553_s21, 16  }
 0x4af   : > { %967 = vsyncadd (%p684_p11), %s553_s21, 4294967280  ;;  %s22_s28 = sadd.s32 1, %s1010_s28   ;;  %s1314_s29 = sld [smem:[#allocation19_spill]] }
 0x4b0   : > { %p19_p4 = scmp.ge.s32.totalorder %s22_s28, 6   ;;  %s1315_s18 = smov %s974_s19 }
 0x4b1   : > { %s1316_s19 = smov %s978_s20  ;;  %s1317_s20 = smov %s1166_s3 }
 0x4b2   : > { %s1318_s21 = smov %s986_s22  ;;  %s1319_s22 = smov %s990_s23 }
 0x4b3   : > { %s1320_s23 = smov %s1169_s11  ;;  %s1321_s24 = smov %s1002_s26 }
 0x4b4   : > { %s1322_s25 = smov %s1006_s27  ;;  %s1324_s27 = smov %s1330_s12 }
 0x4b5   : > { %s1323_s26 = smov %s1314_s29  ;;  %21 = sbr.rel (!%p19_p4) target bundleno = 16 (0x10), region = 133 }
 0x4ba   :  { %558 = vsyncpa [#allocation5], 1 }
 0x4bb   :  { %560 = vsyncpa [#allocation5 + $0x1], 1 }
 0x4bc   :  { %561 = vsyncpa [#allocation8], 1 }
 0x4bd   :  { %562 = vsyncpa [#allocation6], 1 }
 0x4be   :  { %564 = vsyncpa [#allocation6 + $0x1], 1 }

</bundles_post_ra>
